<compile_context>
chip_gen: v5e
topology: v5e:2x2
jax: 0.10.0
libtpu: 0.0.40
codegen_flags: <defaults>
</compile_context>

<pallas_src>
import functools

import numpy as np
import jax
import jax.numpy as jnp
from jax.experimental import pallas as pl
from jax.experimental.pallas import tpu as pltpu


def _dwt_kernel(m_ref, x_ref, ll_ref, hl_ref, lh_ref, hh_ref, *, precision):
    # x_ref block: (tile_rows, 2W); each row = [x[n, 2r, :] | x[n, 2r+1, :]]
    w2 = x_ref.shape[-1]
    w = w2 // 2
    wh = w // 2

    even = x_ref[:, 0:w]          # x[n, 2r, :]
    odd = x_ref[:, w:w2]          # x[n, 2r+1, :]

    s = even + odd                # row-pair sum   (the 1/2 scale lives in m)
    d = odd - even                # row-pair diff

    m = m_ref[...]                # (W, W) = [0.5*pair_sum | 0.5*pair_diff]

    ab = jnp.dot(s, m, preferred_element_type=jnp.float32, precision=precision)
    cd = jnp.dot(d, m, preferred_element_type=jnp.float32, precision=precision)

    ll_ref[...] = ab[:, :wh].astype(ll_ref.dtype)
    hl_ref[...] = ab[:, wh:].astype(hl_ref.dtype)
    lh_ref[...] = cd[:, :wh].astype(lh_ref.dtype)
    hh_ref[...] = cd[:, wh:].astype(hh_ref.dtype)


def _pick_tile_rows(total_rows, row_bytes, target_bytes=2 << 20):
    """~target_bytes of input per grid step, multiple of 8; >=2 steps if possible.

    Footprint per step (f32, double-buffered in/out + intermediates) stays well
    under the 16/32 MiB scoped VMEM defaults; we still raise vmem_limit_bytes
    for headroom on v5e/v6e without assuming more than v7x's 64 MiB physical.
    """
    tr = min(total_rows, max(8, target_bytes // max(row_bytes, 1)))
    tr = max(8, (tr // 8) * 8)
    if tr >= total_rows and total_rows > 8:
        # v7x has 2 TensorCores: give the single 'parallel' axis >= 2 steps.
        half = (total_rows + 1) // 2
        tr = max(8, ((half + 7) // 8) * 8)
    return int(tr)


def dwt(x, *, tile_rows=None):
    """Forward 2-D Haar DWT. Returns (x_LL, x_HL, x_LH, x_HH)."""
    B, C, H, W = x.shape
    assert H % 2 == 0 and W % 2 == 0, "H and W must be even"
    T = B * C * (H // 2)
    W2 = 2 * W
    Wh = W // 2

    # Free (row-major) reshape: row n*(H/2)+r = [x[n, 2r, :], x[n, 2r+1, :]]
    xf = x.reshape(T, W2)

    # Fused lane pair-combine constant with the 1/2 scale folded in:
    #   (s @ m)[:, :Wh] = LL,  (s @ m)[:, Wh:] = HL
    #   (d @ m)[:, :Wh] = LH,  (d @ m)[:, Wh:] = HH
    # TODO(synk): for very large W (>= ~1024) add a second grid axis over
    # column tiles with a (tile_w, tile_w)-local combine constant so the
    # resident constant stays O(tile_w^2) and MACs/byte stay below the HBM
    # balance point on v5e.
    k = np.arange(Wh)
    m_np = np.zeros((W, W), np.float32)
    m_np[2 * k, k] = 0.5
    m_np[2 * k + 1, k] = 0.5
    m_np[2 * k, Wh + k] = -0.5
    m_np[2 * k + 1, Wh + k] = 0.5
    const_dtype = x.dtype if x.dtype in (jnp.bfloat16, jnp.float16) else jnp.float32
    m = jnp.asarray(m_np, dtype=const_dtype)

    # fp32 contraction for f32 inputs (exact vs. the VPU reference);
    # native bf16 MXU path for bf16/f16 inputs.
    precision = (jax.lax.Precision.HIGHEST if x.dtype == jnp.float32
                 else jax.lax.Precision.DEFAULT)

    row_bytes = W2 * x.dtype.itemsize
    if tile_rows is None:
        tile_rows = _pick_tile_rows(T, row_bytes)
    grid = (pl.cdiv(T, tile_rows),)   # ragged last block is masked by Pallas

    band_sds = jax.ShapeDtypeStruct((T, Wh), x.dtype)
    band_spec = pl.BlockSpec((tile_rows, Wh), lambda i: (i, 0))

    kernel = functools.partial(_dwt_kernel, precision=precision)

    ll, hl, lh, hh = pl.pallas_call(
        kernel,
        out_shape=(band_sds, band_sds, band_sds, band_sds),
        grid_spec=pltpu.PrefetchScalarGridSpec(
            num_scalar_prefetch=0,
            grid=grid,
            in_specs=[
                pl.BlockSpec((W, W), lambda i: (0, 0)),          # fused constant (resident)
                pl.BlockSpec((tile_rows, W2), lambda i: (i, 0)),  # packed row pairs
            ],
            out_specs=[band_spec, band_spec, band_spec, band_spec],
        ),
        compiler_params=pltpu.CompilerParams(
            dimension_semantics=("parallel",),
            vmem_limit_bytes=48 * 1024 * 1024,
        ),
    )(m, xf)

    shp = (B, C, H // 2, Wh)  # free reshape back to NCHW sub-band layout
    return ll.reshape(shp), hl.reshape(shp), lh.reshape(shp), hh.reshape(shp)


def dwt_ref(x):
    # Pure-JAX reference matching the PyTorch dwt_init semantics.
    x01 = x[:, :, 0::2, :] / 2
    x02 = x[:, :, 1::2, :] / 2
    x1 = x01[:, :, :, 0::2]
    x2 = x02[:, :, :, 0::2]
    x3 = x01[:, :, :, 1::2]
    x4 = x02[:, :, :, 1::2]
    x_LL = x1 + x2 + x3 + x4
    x_HL = -x1 - x2 + x3 + x4
    x_LH = -x1 + x2 - x3 + x4
    x_HH = x1 - x2 - x3 + x4
    return x_LL, x_HL, x_LH, x_HH


if __name__ == "__main__":
    # DWT has no learnable parameters (requires_grad=False, no weights).
    key = jax.random.PRNGKey(0)
    names = ("LL", "HL", "LH", "HH")

    # Primary check: small NCHW input, f32.
    B, C, H, W = 2, 4, 16, 16
    x = jax.random.normal(key, (B, C, H, W), dtype=jnp.float32)
    outs = jax.block_until_ready(dwt(x))
    refs = dwt_ref(x)
    for name, o, r in zip(names, outs, refs):
        assert o.shape == (B, C, H // 2, W // 2), (name, o.shape)
        assert o.dtype == x.dtype, (name, o.dtype)
        assert jnp.allclose(o, r, atol=1e-5, rtol=1e-5), name

    # Ragged-grid check (T = 15 not a multiple of the 8-row tile): exercises the
    # cdiv grid + masked last block path.
    xb = jax.random.normal(jax.random.PRNGKey(1), (1, 3, 10, 12), dtype=jnp.float32)
    outs_b = jax.block_until_ready(dwt(xb))
    refs_b = dwt_ref(xb)
    for name, o, r in zip(names, outs_b, refs_b):
        assert o.shape == (1, 3, 5, 6), (name, o.shape)
        assert jnp.allclose(o, r, atol=1e-5, rtol=1e-5), name

    # bf16 path check (bf16 constants + native MXU bf16), loose tolerance.
    xc = jax.random.normal(jax.random.PRNGKey(2), (2, 4, 16, 16), dtype=jnp.bfloat16)
    outs_c = jax.block_until_ready(dwt(xc))
    refs_c = dwt_ref(xc)
    for name, o, r in zip(names, outs_c, refs_c):
        assert o.dtype == jnp.bfloat16, (name, o.dtype)
        assert jnp.allclose(o.astype(jnp.float32), r.astype(jnp.float32),
                            atol=5e-2, rtol=5e-2), name

    print("KERNEL_OK")
</pallas_src>

<mosaic_0001>
module attributes {stable_mosaic.version = 11 : i64} {
  func.func @_dwt_kernel(%arg0: i32, %arg1: memref<16x16xf32, #tpu.memory_space<vmem>>, %arg2: memref<32x32xf32, #tpu.memory_space<vmem>>, %arg3: memref<32x8xf32, #tpu.memory_space<vmem>>, %arg4: memref<32x8xf32, #tpu.memory_space<vmem>>, %arg5: memref<32x8xf32, #tpu.memory_space<vmem>>, %arg6: memref<32x8xf32, #tpu.memory_space<vmem>>) attributes {dimension_semantics = [#tpu.dimension_semantics<parallel>], iteration_bounds = array<i64: 2>, scalar_prefetch = 0 : i64, scratch_operands = 0 : i64, tpu.core_type = #tpu.core_type<tc>, window_params = [{pipeline_mode = #tpu.pipeline_mode<synchronous>, transform_indices = @transform_0, window_bounds = array<i64: 16, 16>}, {transform_indices = @transform_1, window_bounds = array<i64: 32, 32>}, {transform_indices = @transform_2, window_bounds = array<i64: 32, 8>}, {transform_indices = @transform_3, window_bounds = array<i64: 32, 8>}, {transform_indices = @transform_4, window_bounds = array<i64: 32, 8>}, {transform_indices = @transform_5, window_bounds = array<i64: 32, 8>}]} {
    %c0 = arith.constant 0 : index
    %c0_0 = arith.constant 0 : index
    %0 = vector.load %arg2[%c0, %c0_0] : memref<32x32xf32, #tpu.memory_space<vmem>>, vector<32x16xf32>
    %c0_1 = arith.constant 0 : index
    %c16 = arith.constant 16 : index
    %1 = vector.load %arg2[%c0_1, %c16] : memref<32x32xf32, #tpu.memory_space<vmem>>, vector<32x16xf32>
    %2 = arith.addf %0, %1 : vector<32x16xf32>
    %3 = arith.subf %1, %0 : vector<32x16xf32>
    %c0_2 = arith.constant 0 : index
    %c0_3 = arith.constant 0 : index
    %4 = vector.load %arg1[%c0_2, %c0_3] : memref<16x16xf32, #tpu.memory_space<vmem>>, vector<16x16xf32>
    %cst = arith.constant dense<0.000000e+00> : vector<32x16xf32>
    %5 = tpu.matmul %2, %4, %cst {dimension_numbers = #tpu.dot_dimension_numbers<[1], [0], [0], [1], [0, 0, 1, 1], [], []>, precision = #tpu.contract_precision<fp32>} : vector<32x16xf32>, vector<16x16xf32>, vector<32x16xf32> -> vector<32x16xf32>
    %cst_4 = arith.constant dense<0.000000e+00> : vector<32x16xf32>
    %6 = tpu.matmul %3, %4, %cst_4 {dimension_numbers = #tpu.dot_dimension_numbers<[1], [0], [0], [1], [0, 0, 1, 1], [], []>, precision = #tpu.contract_precision<fp32>} : vector<32x16xf32>, vector<16x16xf32>, vector<32x16xf32> -> vector<32x16xf32>
    %7 = vector.extract_strided_slice %5 {offsets = [0, 0], sizes = [32, 8], strides = [1, 1]} : vector<32x16xf32> to vector<32x8xf32>
    %c0_5 = arith.constant 0 : index
    %c0_6 = arith.constant 0 : index
    %8 = vector.load %arg3[%c0_5, %c0_6] : memref<32x8xf32, #tpu.memory_space<vmem>>, vector<32x8xf32>
    tpu.vector_store %arg3[%c0_5, %c0_6], %7 {strides = array<i32>} : memref<32x8xf32, #tpu.memory_space<vmem>>, vector<32x8xf32>,
    %9 = vector.extract_strided_slice %5 {offsets = [0, 8], sizes = [32, 8], strides = [1, 1]} : vector<32x16xf32> to vector<32x8xf32>
    %c0_7 = arith.constant 0 : index
    %c0_8 = arith.constant 0 : index
    %10 = vector.load %arg4[%c0_7, %c0_8] : memref<32x8xf32, #tpu.memory_space<vmem>>, vector<32x8xf32>
    tpu.vector_store %arg4[%c0_7, %c0_8], %9 {strides = array<i32>} : memref<32x8xf32, #tpu.memory_space<vmem>>, vector<32x8xf32>,
    %11 = vector.extract_strided_slice %6 {offsets = [0, 0], sizes = [32, 8], strides = [1, 1]} : vector<32x16xf32> to vector<32x8xf32>
    %c0_9 = arith.constant 0 : index
    %c0_10 = arith.constant 0 : index
    %12 = vector.load %arg5[%c0_9, %c0_10] : memref<32x8xf32, #tpu.memory_space<vmem>>, vector<32x8xf32>
    tpu.vector_store %arg5[%c0_9, %c0_10], %11 {strides = array<i32>} : memref<32x8xf32, #tpu.memory_space<vmem>>, vector<32x8xf32>,
    %13 = vector.extract_strided_slice %6 {offsets = [0, 8], sizes = [32, 8], strides = [1, 1]} : vector<32x16xf32> to vector<32x8xf32>
    %c0_11 = arith.constant 0 : index
    %c0_12 = arith.constant 0 : index
    %14 = vector.load %arg6[%c0_11, %c0_12] : memref<32x8xf32, #tpu.memory_space<vmem>>, vector<32x8xf32>
    tpu.vector_store %arg6[%c0_11, %c0_12], %13 {strides = array<i32>} : memref<32x8xf32, #tpu.memory_space<vmem>>, vector<32x8xf32>,
    return
  }
  func.func @transform_0(%arg0: i32) -> (i32, i32) {
    %c0_i32 = arith.constant 0 : i32
    %c0_i32_0 = arith.constant 0 : i32
    %c0_i32_1 = arith.constant 0 : i32
    return %c0_i32, %c0_i32_0 : i32, i32
  }
  func.func @transform_1(%arg0: i32) -> (i32, i32) {
    %c0_i32 = arith.constant 0 : i32
    %c0_i32_0 = arith.constant 0 : i32
    return %arg0, %c0_i32 : i32, i32
  }
  func.func @transform_2(%arg0: i32) -> (i32, i32) {
    %c0_i32 = arith.constant 0 : i32
    %c0_i32_0 = arith.constant 0 : i32
    return %arg0, %c0_i32 : i32, i32
  }
  func.func @transform_3(%arg0: i32) -> (i32, i32) {
    %c0_i32 = arith.constant 0 : i32
    %c0_i32_0 = arith.constant 0 : i32
    return %arg0, %c0_i32 : i32, i32
  }
  func.func @transform_4(%arg0: i32) -> (i32, i32) {
    %c0_i32 = arith.constant 0 : i32
    %c0_i32_0 = arith.constant 0 : i32
    return %arg0, %c0_i32 : i32, i32
  }
  func.func @transform_5(%arg0: i32) -> (i32, i32) {
    %c0_i32 = arith.constant 0 : i32
    %c0_i32_0 = arith.constant 0 : i32
    return %arg0, %c0_i32 : i32, i32
  }
}

</mosaic_0001>

<bundles_post_ra>
// kernel: tpu_custom_call.1
= control target key start
LH: loop header
LB: loop body
LE: loop exit
PB: predicated region body
PF: predicated region fallthrough
CT: control target
= control target key end

     0   :  { %s1123_s18 = smov 0   ;;  %s1256_s0 = inlined_call_operand.vmem [shape: f32[16,16], index: 0, kind: input, shape index: {}]   ;;  %s1257_s1 = inlined_call_operand.vmem [shape: f32[64,32], index: 1, kind: input, shape index: {}]   ;;  %s1258_s2 = inlined_call_operand.vmem [shape: f32[64,8], index: 2, kind: output, shape index: {0}]   ;;  %s1259_s3 = inlined_call_operand.vmem [shape: f32[64,8], index: 3, kind: output, shape index: {1}]   ;;  %s1260_s4 = inlined_call_operand.vmem [shape: f32[64,8], index: 4, kind: output, shape index: {2}]   ;;  %s1261_s5 = inlined_call_operand.vmem [shape: f32[64,8], index: 5, kind: output, shape index: {3}]  }
   0x1 LB: > { %s1054_s19 = sadd.s32 4294967295, %s1088_s18   ;;  %p1058_p0 = scmp.ge.s32.totalorder %s1088_s18, 1  ;;  %s1088_s18 = sphi %s1123_s18, %s16_s18  }
   0x2   : > { %p195_p1 = scmp.lt.s32.totalorder %s1088_s18, 3 }
   0x4   : > { %p196_p2 = pnand %p1058_p0, %p195_p1 }
   0x5   : > { %s1059_s20 = sshll.u32 (!%p196_p2), %s1054_s19, 2  ;;  %s1090_s25 = smov (!%p196_p2), 112  }
   0x6   : > { %199 = sbr.rel (%p196_p2) target bundleno = 566 (0x236), region = 28  ;;  %p239_p3 = scmp.lt.s32.totalorder (!%p196_p2), %s1059_s20, 7 }
   0x7   : > { %s1091_s26 = smov (!%p196_p2), 16   ;;  %s1092_s9 = smov (!%p196_p2), 120  }
   0xb   : > { %s1263_s20 = smov (!%p239_p3, %s1059_s20), 7  ;;  %v309_v4 = vld [vmem:[%s1256_s0 + $0x8] sm:$0xff]  ;;  %v308_v6 = vld [vmem:[%s1256_s0] sm:$0xff]  ;;  %vm310_vm0 = vcmask 130048   ;;  %vm847_vm1 = vcmask 64512  }
   0xc   : > { %s1131_s21 = sshll.u32 %s1263_s20, 3  ;;  %v337_v5 = vand.u32 4294901760, %v309_v4  ;;  %v339_v8 = vand.u32 4294901760, %v308_v6 }
   0xd   : > { %s242_s24 = scalar_lea.vmem %s1257_s1, %s1131_s21  ;;  %s1199_s8 = scalar_lea.vmem %s1258_s2, %s1131_s21 }
   0xe   : > { %v268_v0 = vld [vmem:[%s242_s24] sm:$0xff]  ;;  %v1138_v1 = vld [vmem:[%s242_s24 + $0x8] sm:$0xff]  ;;  %v1142_v2 = vld [vmem:[%s242_s24 + $0x10] sm:$0xff]  ;;  %v1159_v7 = vsub.f32 %v309_v4, %v337_v5  ;;  %473 = vmatpush.msra.mxu3 %v337_v5  ;;  %338 = vmatpush.msra.mxu0 %v337_v5  ;;  %v1162_v10 = vsub.f32 %v308_v6, %v339_v8  ;;  %s1216_s12 = scalar_lea.vmem %s1259_s3, %s1131_s21  ;;  %s1226_s15 = scalar_lea.vmem %s1260_s4, %s1131_s21 }
   0xf   : > { %276 = vrot.lane.b32.xlu1 %v268_v0, %s1090_s25  ;;  %292 = vrot.lane.b32.xlu0 %v268_v0, %s1091_s26  ;;  %v1146_v3 = vld [vmem:[%s242_s24 + $0x18] sm:$0xff]  ;;  %s266_s19 = scalar_lea.vmem %s1261_s5, %s1131_s21 }
  0x10   : > { %278 = vrot.lane.b32.xlu2 %v1138_v1, %s1090_s25  ;;  %v390_v9 = vand.u32 4294901760, %v1159_v7  ;;  %433 = vmatpush.msra.mxu2 %v1159_v7  ;;  %v396_v12 = vand.u32 4294901760, %v1162_v10 }
  0x11   : > { %475 = vmatpush.msra.mxu3 %v339_v8  ;;  %340 = vmatpush.msra.mxu0 %v339_v8 }
  0x12   : > { %v391_v11 = vsub.f32 %v1159_v7, %v390_v9  ;;  %436 = vmatpush.msra.mxu2 %v1162_v10  ;;  %v397_v14 = vsub.f32 %v1162_v10, %v396_v12 }
  0x13   : > { %518 = vmatpush.msrb.mxu0 %v390_v9 }
  0x14   : > { %610 = vmatpush.msrb.mxu2 %v337_v5  ;;  %v392_v13 = vand.u32 4294901760, %v391_v11  ;;  %v398_v15 = vand.u32 4294901760, %v397_v14 }
  0x15   : > { %522 = vmatpush.msrb.mxu0 %v396_v12 }
  0x16   : > { %612 = vmatpush.msrb.mxu2 %v339_v8  ;;  %393 = vmatpush.msra.mxu1 %v392_v13 }
  0x17   : > { %294 = vrot.lane.b32.xlu0 %v1138_v1, %s1091_s26  ;;  %296 = vrot.lane.b32.xlu1 %v1142_v2, %s1091_s26 }
  0x18   : > { %298 = vrot.lane.b32.xlu2 %v1146_v3, %s1091_s26  ;;  %665 = vmatpush.msrb.mxu3 %v392_v13 }
  0x19   : > { %399 = vmatpush.msra.mxu1 %v398_v15 }
  0x1a   : > { %671 = vmatpush.msrb.mxu3 %v398_v15 }
  0x1b   : > { %555 = vmatpush.msrb.mxu1 %v337_v5 }
  0x1d   : > { %557 = vmatpush.msrb.mxu1 %v339_v8 }
  0x1f   : > { %280 = vrot.lane.b32.xlu0 %v1142_v2, %s1090_s25  ;;  %282 = vrot.lane.b32.xlu1 %v1146_v3, %s1090_s25 }
  0x6a   : > { %v279_v16 = vpop.permute.xlu2 %278 }
  0x6b   : > { %v289_v17 = vadd.f32 %v279_v16, %v1138_v1 }
  0x6d   : > { %v315_v18 = vsel %vm310_vm0, %v289_v17, 0 }
  0x6e   : > { %v1171_v23 = vand.u32 4294901760, %v315_v18 }
  0x70   : > { %v350_v27 = vsub.f32 %v315_v18, %v1171_v23 }
  0x72   : > { %v299_v28 = vpop.permute.xlu2 %298  ;;  %v351_v36 = vand.u32 4294901760, %v350_v27 }
  0x73   : > { %v307_v32 = vsub.f32 %v1146_v3, %v299_v28 }
  0x74   : > { %v352_v38 = vsub.f32 %v350_v27, %v351_v36 }
  0x76   : > { %v353_v43 = vand.u32 4294901760, %v352_v38 }
  0x81   : > { %v277_v19 = vpop.permute.xlu1 %276  ;;  %v293_v20 = vpop.permute.xlu0 %292 }
  0x82   : > { %v288_v21 = vadd.f32 %v277_v19, %v268_v0  ;;  %v304_v22 = vsub.f32 %v268_v0, %v293_v20 }
  0x84   : > { %v312_v24 = vsel %vm310_vm0, %v288_v21, 0  ;;  %579 = vrot.lane.b32.xlu2 %v304_v22, %s1090_s25 }
  0x85   : > { %v341_v25 = vand.u32 4294901760, %v312_v24 }
  0x87   : > { %v342_v26 = vsub.f32 %v312_v24, %v341_v25  ;;  %401 = vmatmul.f32.vlgmr.msra.gmra.mxu1 %v341_v25 }
  0x88   : > { %745 = vmatpush.msra.mxu1 %v337_v5 }
  0x89   : > { %v295_v29 = vpop.permute.xlu0 %294  ;;  %439 = vmatmul.f32.vlgmr.msra.gmra.mxu2 %v342_v26  ;;  %v343_v30 = vand.u32 4294901760, %v342_v26  ;;  %v297_v31 = vpop.permute.xlu1 %296 }
  0x8a   : > { %v305_v33 = vsub.f32 %v1138_v1, %v295_v29  ;;  %v306_v34 = vsub.f32 %v1142_v2, %v297_v31  ;;  %747 = vmatpush.msra.mxu1 %v339_v8  ;;  %790 = vmatpush.msra.mxu2 %v390_v9 }
  0x8b   : > { %479 = vmatmul.f32.vlgmr.msra.gmra.mxu3 %v343_v30  ;;  %v344_v35 = vsub.f32 %v342_v26, %v343_v30 }
  0x8c   : > { %581 = vrot.lane.b32.xlu0 %v305_v33, %s1090_s25  ;;  %583 = vrot.lane.b32.xlu1 %v306_v34, %s1090_s25 }
  0x8d   : > { %v345_v37 = vand.u32 4294901760, %v344_v35  ;;  %585 = vrot.lane.b32.xlu2 %v307_v32, %s1090_s25  ;;  %827 = vmatpush.msra.mxu3 %v337_v5 }
  0x8e   : > { %794 = vmatpush.msra.mxu2 %v396_v12 }
  0x8f   : > { %346 = vmatmul.f32.vlgmr.msra.gmra.mxu0 %v345_v37  ;;  %405 = vmatmul.f32.gmra.mxu1 %v1171_v23 }
  0x90   : > { %705 = vmatpush.msra.mxu0 %v1159_v7  ;;  %829 = vmatpush.msra.mxu3 %v339_v8 }
  0x91   : > { %v281_v39 = vpop.permute.xlu0 %280  ;;  %v283_v40 = vpop.permute.xlu1 %282  ;;  %444 = vmatmul.f32.gmra.mxu2 %v350_v27 }
  0x92   : > { %v290_v41 = vadd.f32 %v281_v39, %v1142_v2  ;;  %v291_v42 = vadd.f32 %v283_v40, %v1146_v3  ;;  %708 = vmatpush.msra.mxu0 %v1162_v10 }
  0x93   : > { %485 = vmatmul.f32.gmra.mxu3 %v351_v36 }
  0x94   : > { %v318_v44 = vsel %vm310_vm0, %v290_v41, 0  ;;  %v321_v45 = vsel %vm310_vm0, %v291_v42, 0 }
  0x95   : > { %v357_v46 = vand.u32 4294901760, %v318_v44  ;;  %v365_v47 = vand.u32 4294901760, %v321_v45 }
  0x97   : > { %v358_v48 = vsub.f32 %v318_v44, %v357_v46  ;;  %354 = vmatmul.f32.gmra.mxu0 %v353_v43  ;;  %409 = vmatmul.f32.gmra.mxu1 %v357_v46  ;;  %v366_v49 = vsub.f32 %v321_v45, %v365_v47 }
  0x99   : > { %v359_v50 = vand.u32 4294901760, %v358_v48  ;;  %449 = vmatmul.f32.gmra.mxu2 %v358_v48  ;;  %v367_v52 = vand.u32 4294901760, %v366_v49 }
  0x9b   : > { %v360_v51 = vsub.f32 %v358_v48, %v359_v50  ;;  %491 = vmatmul.f32.gmra.mxu3 %v359_v50  ;;  %v368_v54 = vsub.f32 %v366_v49, %v367_v52 }
  0x9d   : > { %v361_v53 = vand.u32 4294901760, %v360_v51  ;;  %v369_v55 = vand.u32 4294901760, %v368_v54 }
  0x9f   : > { %362 = vmatmul.f32.gmra.mxu0 %v361_v53  ;;  %413 = vmatmul.f32.gmra.mxu1 %v365_v47 }
  0xa1   : > { %454 = vmatmul.f32.gmra.mxu2 %v366_v49 }
  0xa3   : > { %497 = vmatmul.f32.gmra.mxu3 %v367_v52 }
  0xa7   : > { %370 = vmatmul.f32.gmra.mxu0 %v369_v55  ;;  %559 = vmatmul.f32.vlgmr.msrb.gmra.mxu1 %v341_v25 }
  0xaf   : > { %524 = vmatmul.f32.vlgmr.msrb.gmra.mxu0 %v341_v25  ;;  %563 = vmatmul.f32.gmra.mxu1 %v1171_v23 }
  0xb7   : > { %528 = vmatmul.f32.gmra.mxu0 %v1171_v23  ;;  %567 = vmatmul.f32.gmra.mxu1 %v357_v46 }
  0xbf   : > { %532 = vmatmul.f32.gmra.mxu0 %v357_v46  ;;  %571 = vmatmul.f32.gmra.mxu1 %v365_v47 }
  0xc7   : > { %536 = vmatmul.f32.gmra.mxu0 %v365_v47 }
  0xde   : > { %v580_v56 = vpop.permute.xlu2 %579 }
  0xdf   : > { %v587_v57 = vsel %vm310_vm0, %v580_v56, 0 }
  0xe0   : > { %v613_v58 = vand.u32 4294901760, %v587_v57 }
  0xe2   : > { %v614_v59 = vsub.f32 %v587_v57, %v613_v58  ;;  %673 = vmatmul.f32.vlgmr.msrb.gmra.mxu3 %v613_v58 }
  0xe4   : > { %v615_v60 = vand.u32 4294901760, %v614_v59  ;;  %711 = vmatmul.f32.vlgmr.msra.gmra.mxu0 %v614_v59 }
  0xe6   : > { %751 = vmatmul.f32.vlgmr.msra.gmra.mxu1 %v615_v60  ;;  %v616_v61 = vsub.f32 %v614_v59, %v615_v60 }
  0xe7   : > { %v586_v6 = vpop.permute.xlu2 %585 }
  0xe8   : > { %v617_v62 = vand.u32 4294901760, %v616_v61  ;;  %v593_v10 = vsel %vm310_vm0, %v586_v6, 0 }
  0xe9   : > { %v637_v12 = vand.u32 4294901760, %v593_v10 }
  0xea   : > { %618 = vmatmul.f32.vlgmr.msrb.gmra.mxu2 %v617_v62 }
  0xeb   : > { %v638_v15 = vsub.f32 %v593_v10, %v637_v12 }
  0xed   : > { %v639_v20 = vand.u32 4294901760, %v638_v15 }
  0xef   : > { %v640_v22 = vsub.f32 %v638_v15, %v639_v20 }
  0xf1   : > { %v641_v24 = vand.u32 4294901760, %v640_v22 }
  0xfe   : > { %v582_v63 = vpop.permute.xlu0 %581  ;;  %v584_v0 = vpop.permute.xlu1 %583 }
  0xff   : > { %v589_v1 = vsel %vm310_vm0, %v582_v63, 0  ;;  %v591_v2 = vsel %vm310_vm0, %v584_v0, 0 }
 0x100   : > { %v621_v3 = vand.u32 4294901760, %v589_v1  ;;  %v629_v4 = vand.u32 4294901760, %v591_v2 }
 0x102   : > { %v622_v5 = vsub.f32 %v589_v1, %v621_v3  ;;  %677 = vmatmul.f32.gmra.mxu3 %v621_v3  ;;  %v630_v7 = vsub.f32 %v591_v2, %v629_v4 }
 0x104   : > { %v402_v8 = vpop.f32.mrf.mxu1  ;;  %716 = vmatmul.f32.gmra.mxu0 %v622_v5  ;;  %v623_v9 = vand.u32 4294901760, %v622_v5  ;;  %v631_v14 = vand.u32 4294901760, %v630_v7 }
 0x106   : > { %757 = vmatmul.f32.gmra.mxu1 %v623_v9  ;;  %v624_v11 = vsub.f32 %v622_v5, %v623_v9  ;;  %v632_v17 = vsub.f32 %v630_v7, %v631_v14 }
 0x108   : > { %v625_v13 = vand.u32 4294901760, %v624_v11  ;;  %v633_v19 = vand.u32 4294901760, %v632_v17 }
 0x10a   : > { %626 = vmatmul.f32.gmra.mxu2 %v625_v13  ;;  %681 = vmatmul.f32.gmra.mxu3 %v629_v4 }
 0x10c   : > { %v347_v16 = vpop.f32.mrf.mxu0  ;;  %721 = vmatmul.f32.gmra.mxu0 %v630_v7  ;;  %v406_v18 = vpop.f32.mrf.mxu1 }
 0x10d   : > { %v403_v27 = vadd.f32 %v402_v8, %v347_v16  ;;  %v440_v28 = vpop.f32.mrf.mxu2 }
 0x10e   : > { %763 = vmatmul.f32.gmra.mxu1 %v631_v14  ;;  %v480_v31 = vpop.f32.mrf.mxu3 }
 0x10f   : > { %v441_v30 = vadd.f32 %v440_v28, %v403_v27 }
 0x111   : > { %v481_v32 = vadd.f32 %v480_v31, %v441_v30 }
 0x112   : > { %634 = vmatmul.f32.gmra.mxu2 %v633_v19  ;;  %685 = vmatmul.f32.gmra.mxu3 %v637_v12 }
 0x114   : > { %v355_v21 = vpop.f32.mrf.mxu0  ;;  %726 = vmatmul.f32.gmra.mxu0 %v638_v15  ;;  %v410_v23 = vpop.f32.mrf.mxu1 }
 0x115   : > { %v407_v33 = vadd.f32 %v406_v18, %v355_v21  ;;  %v445_v34 = vpop.f32.mrf.mxu2 }
 0x116   : > { %769 = vmatmul.f32.gmra.mxu1 %v639_v20  ;;  %v486_v40 = vpop.f32.mrf.mxu3 }
 0x117   : > { %v446_v39 = vadd.f32 %v445_v34, %v407_v33 }
 0x119   : > { %v487_v41 = vadd.f32 %v486_v40, %v446_v39 }
 0x11a   : > { %642 = vmatmul.f32.gmra.mxu2 %v641_v24  ;;  %831 = vmatmul.f32.vlgmr.msra.gmra.mxu3 %v613_v58 }
 0x11c   : > { %v363_v25 = vpop.f32.mrf.mxu0  ;;  %v414_v26 = vpop.f32.mrf.mxu1 }
 0x11d   : > { %v411_v43 = vadd.f32 %v410_v23, %v363_v25  ;;  %v450_v47 = vpop.f32.mrf.mxu2 }
 0x11e   : > { %v492_v49 = vpop.f32.mrf.mxu3 }
 0x11f   : > { %v451_v48 = vadd.f32 %v450_v47, %v411_v43 }
 0x121   : > { %v493_v50 = vadd.f32 %v492_v49, %v451_v48 }
 0x122   : > { %796 = vmatmul.f32.vlgmr.msra.gmra.mxu2 %v613_v58  ;;  %835 = vmatmul.f32.gmra.mxu3 %v621_v3 }
 0x124   : > { %v371_v29 = vpop.f32.mrf.mxu0  ;;  %v560_v35 = vpop.f32.mrf.mxu1 }
 0x125   : > { %v415_v53 = vadd.f32 %v414_v26, %v371_v29  ;;  %v455_v55 = vpop.f32.mrf.mxu2 }
 0x126   : > { %v498_v58 = vpop.f32.mrf.mxu3 }
 0x127   : > { %v456_v57 = vadd.f32 %v455_v55, %v415_v53 }
 0x129   : > { %v499_v59 = vadd.f32 %v498_v58, %v456_v57 }
 0x12a   : > { %800 = vmatmul.f32.gmra.mxu2 %v621_v3  ;;  %839 = vmatmul.f32.gmra.mxu3 %v629_v4 }
 0x12c   : > { %v525_v36 = vpop.f32.mrf.mxu0  ;;  %v564_v45 = vpop.f32.mrf.mxu1 }
 0x12d   : > { %v526_v37 = vadd.f32 %v525_v36, %v481_v32 }
 0x12f   : > { %v561_v38 = vadd.f32 %v560_v35, %v526_v37 }
 0x131   : > { %848 = vst.msk [vmem:[%s1199_s8] sm:$0xff] %vm847_vm1, %v561_v38  ;;  %856 = vrot.lane.b32.xlu0 %v561_v38, %s1092_s9 }
 0x132   : > { %804 = vmatmul.f32.gmra.mxu2 %v629_v4  ;;  %843 = vmatmul.f32.gmra.mxu3 %v637_v12 }
 0x134   : > { %v529_v42 = vpop.f32.mrf.mxu0  ;;  %v568_v54 = vpop.f32.mrf.mxu1 }
 0x135   : > { %v530_v44 = vadd.f32 %v529_v42, %v487_v41 }
 0x137   : > { %v565_v46 = vadd.f32 %v564_v45, %v530_v44 }
 0x139   : > { %849 = vst.msk [vmem:[%s1199_s8 + $0x8] sm:$0xff] %vm847_vm1, %v565_v46  ;;  %858 = vrot.lane.b32.xlu2 %v565_v46, %s1092_s9 }
 0x13a   : > { %808 = vmatmul.f32.gmra.mxu2 %v637_v12 }
 0x13c   : > { %v533_v51 = vpop.f32.mrf.mxu0  ;;  %v572_v62 = vpop.f32.mrf.mxu1 }
 0x13d   : > { %v534_v52 = vadd.f32 %v533_v51, %v493_v50 }
 0x13f   : > { %v569_v56 = vadd.f32 %v568_v54, %v534_v52 }
 0x141   : > { %860 = vrot.lane.b32.xlu1 %v569_v56, %s1092_s9  ;;  %850 = vst.msk [vmem:[%s1199_s8 + $0x10] sm:$0xff] %vm847_vm1, %v569_v56 }
 0x144   : > { %v537_v60 = vpop.f32.mrf.mxu0 }
 0x145   : > { %v538_v61 = vadd.f32 %v537_v60, %v499_v59 }
 0x147   : > { %v573_v63 = vadd.f32 %v572_v62, %v538_v61 }
 0x149   : > { %851 = vst.msk [vmem:[%s1199_s8 + $0x18] sm:$0xff] %vm847_vm1, %v573_v63 }
 0x161   : > { %v712_v7 = vpop.f32.mrf.mxu0 }
 0x163   : > { %v752_v10 = vpop.f32.mrf.mxu1 }
 0x165   : > { %v674_v0 = vpop.f32.mrf.mxu3 }
 0x16d   : > { %v619_v1 = vpop.f32.mrf.mxu2 }
 0x16e   : > { %v675_v8 = vadd.f32 %v674_v0, %v619_v1 }
 0x170   : > { %v713_v11 = vadd.f32 %v712_v7, %v675_v8 }
 0x172   : > { %v753_v17 = vadd.f32 %v752_v10, %v713_v11 }
 0x181   : > { %v717_v13 = vpop.f32.mrf.mxu0 }
 0x183   : > { %v758_v20 = vpop.f32.mrf.mxu1 }
 0x185   : > { %v678_v2 = vpop.f32.mrf.mxu3 }
 0x189   : > { %v722_v26 = vpop.f32.mrf.mxu0 }
 0x18b   : > { %v764_v31 = vpop.f32.mrf.mxu1 }
 0x18d   : > { %v627_v3 = vpop.f32.mrf.mxu2  ;;  %v682_v4 = vpop.f32.mrf.mxu3 }
 0x18e   : > { %v679_v15 = vadd.f32 %v678_v2, %v627_v3 }
 0x190   : > { %v718_v21 = vadd.f32 %v717_v13, %v679_v15 }
 0x191   : > { %v727_v37 = vpop.f32.mrf.mxu0 }
 0x192   : > { %v759_v25 = vadd.f32 %v758_v20, %v718_v21 }
 0x193   : > { %v859_v16 = vpop.permute.xlu2 %858  ;;  %v770_v41 = vpop.f32.mrf.mxu1 }
 0x194   : > { %869 = vst.msk [vmem:[%s1216_s12 + $0x8] sm:$0xff] %vm847_vm1, %v859_v16 }
 0x195   : > { %v635_v5 = vpop.f32.mrf.mxu2  ;;  %v686_v6 = vpop.f32.mrf.mxu3 }
 0x196   : > { %v683_v24 = vadd.f32 %v682_v4, %v635_v5 }
 0x198   : > { %v723_v29 = vadd.f32 %v722_v26, %v683_v24 }
 0x19a   : > { %v765_v33 = vadd.f32 %v764_v31, %v723_v29 }
 0x19d   : > { %v643_v9 = vpop.f32.mrf.mxu2  ;;  %v832_v12 = vpop.f32.mrf.mxu3 }
 0x19e   : > { %v687_v32 = vadd.f32 %v686_v6, %v643_v9 }
 0x1a0   : > { %v728_v38 = vadd.f32 %v727_v37, %v687_v32 }
 0x1a2   : > { %v771_v42 = vadd.f32 %v770_v41, %v728_v38 }
 0x1a3   : > { %v857_v14 = vpop.permute.xlu0 %856 }
 0x1a4   : > { %868 = vst.msk [vmem:[%s1216_s12] sm:$0xff] %vm847_vm1, %v857_v14 }
 0x1a5   : > { %v797_v18 = vpop.f32.mrf.mxu2  ;;  %v836_v23 = vpop.f32.mrf.mxu3 }
 0x1a6   : > { %v798_v19 = vadd.f32 %v797_v18, %v753_v17 }
 0x1a8   : > { %v833_v22 = vadd.f32 %v832_v12, %v798_v19 }
 0x1aa   : > { %872 = vst.msk [vmem:[%s1226_s15] sm:$0xff] %vm847_vm1, %v833_v22  ;;  %880 = vrot.lane.b32.xlu1 %v833_v22, %s1092_s9 }
 0x1ad   : > { %v801_v27 = vpop.f32.mrf.mxu2  ;;  %v840_v34 = vpop.f32.mrf.mxu3 }
 0x1ae   : > { %v802_v28 = vadd.f32 %v801_v27, %v759_v25 }
 0x1b0   : > { %v837_v30 = vadd.f32 %v836_v23, %v802_v28 }
 0x1b2   : > { %873 = vst.msk [vmem:[%s1226_s15 + $0x8] sm:$0xff] %vm847_vm1, %v837_v30  ;;  %882 = vrot.lane.b32.xlu0 %v837_v30, %s1092_s9 }
 0x1b3   : > { %v861_v40 = vpop.permute.xlu1 %860 }
 0x1b4   : > { %870 = vst.msk [vmem:[%s1216_s12 + $0x10] sm:$0xff] %vm847_vm1, %v861_v40 }
 0x1b5   : > { %v805_v35 = vpop.f32.mrf.mxu2  ;;  %v844_v45 = vpop.f32.mrf.mxu3 }
 0x1b6   : > { %v806_v36 = vadd.f32 %v805_v35, %v765_v33 }
 0x1b8   : > { %v841_v39 = vadd.f32 %v840_v34, %v806_v36 }
 0x1ba   : > { %874 = vst.msk [vmem:[%s1226_s15 + $0x10] sm:$0xff] %vm847_vm1, %v841_v39  ;;  %884 = vrot.lane.b32.xlu2 %v841_v39, %s1092_s9  ;;  %862 = vrot.lane.b32.xlu0 %v573_v63, %s1092_s9 }
 0x1bd   : > { %v809_v43 = vpop.f32.mrf.mxu2 }
 0x1be   : > { %v810_v44 = vadd.f32 %v809_v43, %v771_v42 }
 0x1c0   : > { %v845_v46 = vadd.f32 %v844_v45, %v810_v44 }
 0x1c2   : > { %875 = vst.msk [vmem:[%s1226_s15 + $0x18] sm:$0xff] %vm847_vm1, %v845_v46  ;;  %886 = vrot.lane.b32.xlu1 %v845_v46, %s1092_s9 }
 0x214   : > { %v885_v49 = vpop.permute.xlu2 %884 }
 0x215   : > { %894 = vst.msk [vmem:[%s266_s19 + $0x10] sm:$0xff] %vm847_vm1, %v885_v49 }
 0x21c   : > { %v881_v47 = vpop.permute.xlu1 %880 }
 0x21d   : > { %892 = vst.msk [vmem:[%s266_s19] sm:$0xff] %vm847_vm1, %v881_v47 }
 0x224   : > { %v883_v48 = vpop.permute.xlu0 %882 }
 0x225   : > { %893 = vst.msk [vmem:[%s266_s19 + $0x8] sm:$0xff] %vm847_vm1, %v883_v48 }
 0x22c   : > { %v863_v50 = vpop.permute.xlu0 %862 }
 0x22d   : > { %871 = vst.msk [vmem:[%s1216_s12 + $0x18] sm:$0xff] %vm847_vm1, %v863_v50 }
 0x234   : > { %v887_v51 = vpop.permute.xlu1 %886 }
 0x235   : > { %895 = vst.msk [vmem:[%s266_s19 + $0x18] sm:$0xff] %vm847_vm1, %v887_v51 }
 0x236 PF: > { %s16_s18 = sadd.s32 1, %s1088_s18  }
 0x237   : > { %p13_p4 = scmp.ge.s32.totalorder %s16_s18, 4  }
 0x239   :  { %15 = sbr.rel (!%p13_p4) target bundleno = 1 (0x1), region = 94 }

</bundles_post_ra>
